<compile_context>
chip_gen: v5e
topology: v5e:2x2
jax: 0.10.0
libtpu: 0.0.40
codegen_flags: <defaults>
</compile_context>

<pallas_src>
import functools

import jax
import jax.numpy as jnp
from jax.experimental import pallas as pl
from jax.experimental.pallas import tpu as pltpu


def _round_up(x: int, m: int) -> int:
    return ((x + m - 1) // m) * m


def _choose_tile(dim: int, align: int, cap: int) -> int:
    """Pick a tile size (multiple of `align`, <= cap) that minimizes padding
    of `dim` up to a tile multiple; prefer larger tiles on ties."""
    dim_a = _round_up(dim, align)
    if dim_a <= cap:
        return dim_a
    best_t, best_pad = align, None
    for t in range(align, cap + 1, align):
        pad = _round_up(dim, t) - dim
        if best_pad is None or pad < best_pad or (pad == best_pad and t > best_t):
            best_t, best_pad = t, pad
    return best_t


# ---------------------------------------------------------------------------
# Kernels
# ---------------------------------------------------------------------------

def _dense_kernel_single_k(x_ref, w_ref, b_ref, o_ref):
    # x_ref: (tm, Kp), w_ref: (Kp, tn), b_ref: (1, tn), o_ref: (tm, tn)
    acc = jnp.dot(x_ref[...], w_ref[...], preferred_element_type=jnp.float32)
    o_ref[...] = (acc + b_ref[...]).astype(o_ref.dtype)


def _dense_kernel_multi_k(x_ref, w_ref, b_ref, o_ref, acc_ref):
    # x_ref: (tm, tk), w_ref: (tk, tn), b_ref: (1, tn), o_ref/acc_ref: (tm, tn)
    k = pl.program_id(2)

    @pl.when(k == 0)
    def _():
        acc_ref[...] = jnp.zeros_like(acc_ref)

    acc_ref[...] += jnp.dot(x_ref[...], w_ref[...],
                            preferred_element_type=jnp.float32)

    @pl.when(k == pl.num_programs(2) - 1)
    def _():
        o_ref[...] = (acc_ref[...] + b_ref[...]).astype(o_ref.dtype)


# ---------------------------------------------------------------------------
# One-time parameter preparation (do this at model-load time, not per call)
# ---------------------------------------------------------------------------

def prepare_dense_params(weight, bias, *, compute_dtype=None,
                         tn_cap=512, tk_cap=2048):
    """Transpose + pad nn.Linear params once.

    weight: (d_out, d_in) PyTorch layout.
    bias:   (d_out,)
    Returns a dict consumed by `dense_forward`.
    """
    d_out, d_in = weight.shape
    assert bias.shape == (d_out,)

    tn = _choose_tile(d_out, 128, tn_cap)   # lane-dense N tile
    tk = _choose_tile(d_in, 128, tk_cap)    # MXU-aligned K tile
    Np = _round_up(d_out, tn)
    Kp = _round_up(d_in, tk)

    w_t = weight.T                          # (d_in, d_out), one-time transpose
    if (Kp, Np) != (d_in, d_out):
        w_t = jnp.pad(w_t, ((0, Kp - d_in), (0, Np - d_out)))
    b = bias if Np == d_out else jnp.pad(bias, ((0, Np - d_out),))
    b = b.reshape(1, Np)

    if compute_dtype is not None:
        w_t = w_t.astype(compute_dtype)

    return dict(w=w_t, b=b, d_in=d_in, d_out=d_out, tn=tn, tk=tk,
                compute_dtype=compute_dtype)


# ---------------------------------------------------------------------------
# Forward
# ---------------------------------------------------------------------------

def dense_forward(x, params, *, tm_cap=512):
    """Equivalent of PyTorch: self.dense(x).unsqueeze(2).unsqueeze(3).

    x: (B, input_dim);  returns (B, output_dim, 1, 1).
    """
    B, d_in = x.shape
    assert d_in == params["d_in"]

    w = params["w"]                     # (Kp, Np), pre-transposed + padded
    b = params["b"]                     # (1, Np)
    Kp, Np = w.shape
    tn, tk = params["tn"], params["tk"]
    d_out = params["d_out"]
    out_dtype = x.dtype

    # ---- M tile: minimize padding, sublane aligned ----
    tm = _choose_tile(B, 8, tm_cap)
    Bp = _round_up(B, tm)

    # ---- v7x megacore: ensure >= 2 parallel (M, N) tiles when possible ----
    if (Bp // tm) * (Np // tn) < 2:
        if tn >= 256:
            tn //= 2                    # still a 128-multiple dividing Np
        elif tm >= 16 and tm % 16 == 0:
            tm //= 2                    # still an 8-multiple dividing Bp

    # ---- pad activations only when needed (weight/bias already padded) ----
    x_p = x
    if (Bp, Kp) != (B, d_in):
        x_p = jnp.pad(x, ((0, Bp - B), (0, Kp - d_in)))
    if params["compute_dtype"] is not None:
        x_p = x_p.astype(params["compute_dtype"])

    n_k = Kp // tk
    compiler_params_common = dict(vmem_limit_bytes=32 * 1024 * 1024)

    if n_k == 1:
        # Hot path: whole K fits one tile; no accumulator scratch needed.
        grid = (Bp // tm, Np // tn)
        out_padded = pl.pallas_call(
            _dense_kernel_single_k,
            out_shape=jax.ShapeDtypeStruct((Bp, Np), out_dtype),
            grid_spec=pltpu.PrefetchScalarGridSpec(
                num_scalar_prefetch=0,
                grid=grid,
                in_specs=[
                    pl.BlockSpec((tm, Kp), lambda i, j: (i, 0)),   # x
                    pl.BlockSpec((Kp, tn), lambda i, j: (0, j)),   # weight (K, N)
                    pl.BlockSpec((1, tn), lambda i, j: (0, j)),    # bias
                ],
                out_specs=pl.BlockSpec((tm, tn), lambda i, j: (i, j)),
            ),
            compiler_params=pltpu.CompilerParams(
                dimension_semantics=("parallel", "parallel"),
                **compiler_params_common,
            ),
        )(x_p, w, b)
    else:
        grid = (Bp // tm, Np // tn, n_k)
        out_padded = pl.pallas_call(
            _dense_kernel_multi_k,
            out_shape=jax.ShapeDtypeStruct((Bp, Np), out_dtype),
            grid_spec=pltpu.PrefetchScalarGridSpec(
                num_scalar_prefetch=0,
                grid=grid,
                in_specs=[
                    pl.BlockSpec((tm, tk), lambda i, j, k: (i, k)),   # x
                    pl.BlockSpec((tk, tn), lambda i, j, k: (k, j)),   # weight (K, N)
                    pl.BlockSpec((1, tn), lambda i, j, k: (0, j)),    # bias
                ],
                out_specs=pl.BlockSpec((tm, tn), lambda i, j, k: (i, j)),
                scratch_shapes=[pltpu.VMEM((tm, tn), jnp.float32)],
            ),
            compiler_params=pltpu.CompilerParams(
                dimension_semantics=("parallel", "parallel", "arbitrary"),
                **compiler_params_common,
            ),
        )(x_p, w, b)

    # Slice off padding only if any exists; reshape is metadata-only.
    out_2d = out_padded
    if Bp != B or Np != d_out:
        out_2d = out_padded[:B, :d_out]
    return out_2d.reshape(B, d_out, 1, 1)


# ---------------------------------------------------------------------------
# Demo / self-test
# ---------------------------------------------------------------------------

if __name__ == "__main__":
    input_dim = 32
    output_dim = 16
    batch = 2

    key = jax.random.PRNGKey(0)
    kx, kw, kb = jax.random.split(key, 3)

    # Deterministic parameter init mimicking nn.Linear (uniform +/- 1/sqrt(in)).
    bound = 1.0 / (input_dim ** 0.5)
    weight = jax.random.uniform(
        kw, (output_dim, input_dim), jnp.float32, minval=-bound, maxval=bound
    )
    bias = jax.random.uniform(
        kb, (output_dim,), jnp.float32, minval=-bound, maxval=bound
    )
    x = jax.random.normal(kx, (batch, input_dim), jnp.float32)

    # One-time parameter prep (transpose + pad weight/bias outside the hot path).
    params = prepare_dense_params(weight, bias)

    fwd = jax.jit(functools.partial(dense_forward, params=params))
    out = fwd(x)
    out = jax.block_until_ready(out)

    # Sanity check against a plain JAX reference.
    ref = (x @ weight.T + bias).reshape(batch, output_dim, 1, 1)
    assert out.shape == (batch, output_dim, 1, 1)
    assert jnp.allclose(out, ref, atol=1e-5, rtol=1e-5)

    print("KERNEL_OK")
</pallas_src>

<mosaic_0001>
module attributes {stable_mosaic.version = 11 : i64} {
  func.func @_dense_kernel_single_k(%arg0: i32, %arg1: i32, %arg2: memref<8x128xf32, #tpu.memory_space<vmem>>, %arg3: memref<128x128xf32, #tpu.memory_space<vmem>>, %arg4: memref<1x128xf32, #tpu.memory_space<vmem>>, %arg5: memref<8x128xf32, #tpu.memory_space<vmem>>) attributes {dimension_semantics = [#tpu.dimension_semantics<parallel>, #tpu.dimension_semantics<parallel>], iteration_bounds = array<i64: 1, 1>, scalar_prefetch = 0 : i64, scratch_operands = 0 : i64, tpu.core_type = #tpu.core_type<tc>, window_params = [{transform_indices = @transform_0, window_bounds = array<i64: 8, 128>}, {transform_indices = @transform_1, window_bounds = array<i64: 128, 128>}, {transform_indices = @transform_2, window_bounds = array<i64: 1, 128>}, {transform_indices = @transform_3, window_bounds = array<i64: 8, 128>}]} {
    %c0 = arith.constant 0 : index
    %c0_0 = arith.constant 0 : index
    %0 = vector.load %arg2[%c0, %c0_0] : memref<8x128xf32, #tpu.memory_space<vmem>>, vector<8x128xf32>
    %c0_1 = arith.constant 0 : index
    %c0_2 = arith.constant 0 : index
    %1 = vector.load %arg3[%c0_1, %c0_2] : memref<128x128xf32, #tpu.memory_space<vmem>>, vector<128x128xf32>
    %cst = arith.constant dense<0.000000e+00> : vector<8x128xf32>
    %2 = tpu.matmul %0, %1, %cst {dimension_numbers = #tpu.dot_dimension_numbers<[1], [0], [0], [1], [0, 0, 1, 1], [], []>} : vector<8x128xf32>, vector<128x128xf32>, vector<8x128xf32> -> vector<8x128xf32>
    %c0_3 = arith.constant 0 : index
    %c0_4 = arith.constant 0 : index
    %3 = vector.load %arg4[%c0_3, %c0_4] : memref<1x128xf32, #tpu.memory_space<vmem>>, vector<1x128xf32>
    %4 = vector.broadcast %3 : vector<1x128xf32> to vector<8x128xf32>
    %5 = arith.addf %2, %4 : vector<8x128xf32>
    %c0_5 = arith.constant 0 : index
    %c0_6 = arith.constant 0 : index
    %6 = vector.load %arg5[%c0_5, %c0_6] : memref<8x128xf32, #tpu.memory_space<vmem>>, vector<8x128xf32>
    tpu.vector_store %arg5[%c0_5, %c0_6], %5 {strides = array<i32>} : memref<8x128xf32, #tpu.memory_space<vmem>>, vector<8x128xf32>,
    return
  }
  func.func @transform_0(%arg0: i32, %arg1: i32) -> (i32, i32) {
    %c0_i32 = arith.constant 0 : i32
    %c0_i32_0 = arith.constant 0 : i32
    return %arg0, %c0_i32 : i32, i32
  }
  func.func @transform_1(%arg0: i32, %arg1: i32) -> (i32, i32) {
    %c0_i32 = arith.constant 0 : i32
    %c0_i32_0 = arith.constant 0 : i32
    return %c0_i32, %arg1 : i32, i32
  }
  func.func @transform_2(%arg0: i32, %arg1: i32) -> (i32, i32) {
    %c0_i32 = arith.constant 0 : i32
    %c0_i32_0 = arith.constant 0 : i32
    return %c0_i32, %arg1 : i32, i32
  }
  func.func @transform_3(%arg0: i32, %arg1: i32) -> (i32, i32) {
    %c0_i32 = arith.constant 0 : i32
    return %arg0, %arg1 : i32, i32
  }
}

</mosaic_0001>

<bundles_post_ra>
// kernel: dense_forward.1
= control target key start
LH: loop header
LB: loop body
LE: loop exit
PB: predicated region body
PF: predicated region fallthrough
CT: control target
= control target key end

     0   :  { %8 = vsyncpa [#allocation3], 0  ;;  %s107_s15 = smov [#allocation2]   ;;  %s108_s17 = smov 128   ;;  %s142_s0 = inlined_call_operand.vmem [shape: f32[8,128], index: 0, kind: input, shape index: {}]   ;;  %s143_s1 = inlined_call_operand.hbm [shape: f32[128,128], index: 1, kind: input, shape index: {}]   ;;  %s144_s2 = inlined_call_operand.vmem [shape: f32[1,128], index: 2, kind: input, shape index: {}]   ;;  %s145_s3 = inlined_call_operand.vmem [shape: f32[8,128], index: 3, kind: output, shape index: {}]  }
   0x1   :  { %s15_s14 = sshll.u32 %s143_s1, 4  ;;  %s17_s16 = sshll.u32 %s107_s15, 4  ;;  %s16_s14 = int_to_ptr.hbm [resolvable:$true] %s15_s14  ;;  %s18_s16 = int_to_ptr.vmem [resolvable:$true] %s17_s16 }
   0x2   :  { %s109_s18 = smov 8  }
   0x3   :  { %23 = dma.hbm_to_vmem [thread:$0]  %s16_s14, 2048, %s18_s16, [#allocation3], %s108_s17, %s108_s17, %s109_s18  }
   0x4   :  { %105 = dma.done.wait [#allocation3], 2048  }
   0x5   :  { %106 = vsyncadd [#allocation3], 4294965248  ;;  %v46_v0 = vld [vmem:[#allocation2 + $0x78] sm:$0xff]  ;;  %v45_v1 = vld [vmem:[#allocation2 + $0x70] sm:$0xff] }
   0x6   :  { %51 = vmatpush.msra.mxu0 %v46_v0  ;;  %v44_v2 = vld [vmem:[#allocation2 + $0x68] sm:$0xff]  ;;  %v43_v3 = vld [vmem:[#allocation2 + $0x60] sm:$0xff]  ;;  %v42_v4 = vld [vmem:[#allocation2 + $0x58] sm:$0xff] }
   0x7   :  { %v41_v5 = vld [vmem:[#allocation2 + $0x50] sm:$0xff]  ;;  %v40_v6 = vld [vmem:[#allocation2 + $0x48] sm:$0xff]  ;;  %v39_v7 = vld [vmem:[#allocation2 + $0x40] sm:$0xff] }
   0x8   :  { %52 = vmatpush.msra.mxu0 %v45_v1  ;;  %v38_v8 = vld [vmem:[#allocation2 + $0x38] sm:$0xff]  ;;  %v37_v9 = vld [vmem:[#allocation2 + $0x30] sm:$0xff]  ;;  %v36_v10 = vld [vmem:[#allocation2 + $0x28] sm:$0xff] }
   0x9   :  { %v35_v11 = vld [vmem:[#allocation2 + $0x20] sm:$0xff]  ;;  %v34_v12 = vld [vmem:[#allocation2 + $0x18] sm:$0xff]  ;;  %v33_v13 = vld [vmem:[#allocation2 + $0x10] sm:$0xff] }
   0xa   :  { %53 = vmatpush.msra.mxu0 %v44_v2  ;;  %v32_v14 = vld [vmem:[#allocation2 + $0x8] sm:$0xff]  ;;  %v31_v15 = vld [vmem:[#allocation2] sm:$0xff] }
   0xb   :  { %v30_v16 = vld [vmem:[%s142_s0] sm:$0xff] }
   0xc   :  { %54 = vmatpush.msra.mxu0 %v43_v3  ;;  %v80_v17 = vld [vmem:[%s144_s2] ss:$0 sm:$0xff] }
   0xe   :  { %55 = vmatpush.msra.mxu0 %v42_v4 }
  0x10   :  { %56 = vmatpush.msra.mxu0 %v41_v5 }
  0x12   :  { %57 = vmatpush.msra.mxu0 %v40_v6 }
  0x14   :  { %58 = vmatpush.msra.mxu0 %v39_v7 }
  0x16   :  { %59 = vmatpush.msra.mxu0 %v38_v8 }
  0x18   :  { %60 = vmatpush.msra.mxu0 %v37_v9 }
  0x1a   :  { %61 = vmatpush.msra.mxu0 %v36_v10 }
  0x1c   :  { %62 = vmatpush.msra.mxu0 %v35_v11 }
  0x1e   :  { %63 = vmatpush.msra.mxu0 %v34_v12 }
  0x20   :  { %64 = vmatpush.msra.mxu0 %v33_v13 }
  0x22   :  { %65 = vmatpush.msra.mxu0 %v32_v14 }
  0x24   :  { %66 = vmatpush.msra.mxu0 %v31_v15 }
  0x25   :  { %67 = vmatmul.f32.vlgmr.msra.gmra.mxu0 %v30_v16 }
  0xa2   :  { %v68_v18 = vpop.f32.mrf.mxu0 }
  0xa3   :  { %v69_v19 = vadd.f32 %v80_v17, %v68_v18 }
  0xa5   :  { %71 = vst [vmem:[%s145_s3] sm:$0xff] %v69_v19 }
  0xa6   :  { %76 = vsyncpa [#allocation3], 1 }

</bundles_post_ra>
